<compile_context>
chip_gen: v6e
topology: v6e:2x2x1
jax: 0.10.0
libtpu: 0.0.40
codegen_flags: <defaults>
</compile_context>

<pallas_src>
import functools
import math

import jax
import jax.numpy as jnp
from jax.experimental import pallas as pl
from jax.experimental.pallas import tpu as pltpu


def _round_up(x: int, m: int) -> int:
    return ((x + m - 1) // m) * m


# --------------------------------------------------------------------------- #
# Kernel
# --------------------------------------------------------------------------- #
def adapter_kernel(gamma_ref, x_ref, w1_ref, b1_ref, w2_ref, b2_ref,
                   out_ref, acc_ref):
    """Grid = (row_tiles, hidden_tiles); hidden axis is the reduction axis."""
    j = pl.program_id(1)

    @pl.when(j == 0)
    def _():
        acc_ref[...] = jnp.zeros_like(acc_ref)

    x_bf = x_ref[...].astype(jnp.bfloat16)                      # (TM, D)

    # First linear block: bf16 MXU inputs, f32 accumulation, f32 bias.
    h = jnp.dot(x_bf, w1_ref[...],
                preferred_element_type=jnp.float32) + b1_ref[...]   # (TM, TN)

    # Exact GELU (matches torch.nn.GELU default): 0.5*x*(1+erf(x/sqrt(2))).
    inv_sqrt2 = jnp.float32(1.0 / math.sqrt(2.0))
    h = 0.5 * h * (1.0 + jax.lax.erf(h * inv_sqrt2))

    # Second linear block: accumulate the partial (TM, D) output in f32.
    acc_ref[...] += jnp.dot(h.astype(jnp.bfloat16), w2_ref[...],
                            preferred_element_type=jnp.float32)

    @pl.when(j == pl.num_programs(1) - 1)
    def _():
        gamma = gamma_ref[0, 0]
        y = acc_ref[...] + b2_ref[...]
        out_ref[...] = x_ref[...] + gamma * y                    # f32 residual


# --------------------------------------------------------------------------- #
# Capability probe: is pipeline_mode=pl.Buffered(1) supported on this backend?
# --------------------------------------------------------------------------- #
def _probe_kernel(x_ref, o_ref):
    o_ref[...] = x_ref[...] + 1.0


@functools.lru_cache(maxsize=1)
def _single_buffer_supported() -> bool:
    try:
        spec = pl.BlockSpec((8, 128), lambda i: (0, 0),
                            pipeline_mode=pl.Buffered(1))
        out = pl.pallas_call(
            _probe_kernel,
            out_shape=jax.ShapeDtypeStruct((8, 128), jnp.float32),
            grid=(1,),
            in_specs=[spec],
            out_specs=pl.BlockSpec((8, 128), lambda i: (0, 0)),
        )(jnp.zeros((8, 128), jnp.float32))
        jax.block_until_ready(out)
        return True
    except Exception:
        return False


# --------------------------------------------------------------------------- #
# Planning: per-generation VMEM budget and tile sizes (static, outside jit)
# --------------------------------------------------------------------------- #
def _vmem_budget_bytes() -> int:
    cap = 64 << 20                       # conservative default (v7x physical)
    try:
        cap = int(pltpu.get_tpu_info().vmem_capacity_bytes)
    except Exception:
        pass
    headroom = max(8 << 20, cap // 8)    # room for Mosaic scratch/spill slots
    return cap - headroom                # ~56 MiB v7x, ~112 MiB v5e/v6e


def _plan_tiles(n: int, d: int, budget: int):
    # Row tile: inversely proportional to D so (TM, D) f32 tiles are >=1-2 MiB,
    # capped so the row axis has >=2 steps (both v7x TensorCores get work).
    if d <= 512:
        tm = 1024
    elif d <= 2048:
        tm = 512
    else:
        tm = 256
    tm = min(tm, _round_up(n, 8))
    if n > 8:
        tm = min(tm, _round_up(-(-n // 2), 8))
    tm = max(8, (tm // 8) * 8)

    # Hidden-dim tile candidates: full D (resident weights) first, then
    # lane-aligned power-of-two divisors (streamed weights for large D).
    cands = [d]
    t = d // 2
    while t >= 128:
        if d % t == 0 and t % 128 == 0:
            cands.append(t)
        t //= 2

    def est(tm_, tn_):
        resident = tn_ == d
        wbuf = 1 if resident else 2                 # Buffered(1) when resident
        weights = wbuf * 2 * d * tn_ * 2            # w1 + w2, bf16
        biases = wbuf * tn_ * 4 + d * 4             # b1 + b2, f32
        io = 2 * 2 * tm_ * d * 4                    # x/out tiles, double-buffered
        acc = tm_ * d * 4                           # f32 accumulator scratch
        return weights + biases + io + acc + (2 << 20)

    tm_floor = min(tm, 128)
    for tn in cands:                    # prefer keeping weights resident
        tm_try = tm
        while True:
            if est(tm_try, tn) <= budget:
                return tm_try, tn
            if tm_try <= tm_floor:
                break
            tm_try = max(tm_floor, ((tm_try // 2) // 8) * 8)
    # Best effort for extreme D; vmem_limit still bounds the compiler.
    return max(8, tm_floor), cands[-1]


# --------------------------------------------------------------------------- #
# Wrappers
# --------------------------------------------------------------------------- #
def prepare_adapter_params(w1, b1, w2, b2):
    """One-time (init) cast: weights -> bf16 (MXU-native), biases -> f32 rows.

    Weights are stored as (in, out) == W^T relative to torch.nn.Linear, so the
    kernel computes x @ w directly.
    """
    return (jnp.asarray(w1, jnp.bfloat16),
            jnp.asarray(b1, jnp.float32).reshape(1, -1),
            jnp.asarray(w2, jnp.bfloat16),
            jnp.asarray(b2, jnp.float32).reshape(1, -1))


@functools.partial(jax.jit,
                   static_argnames=("tm", "tn", "vmem_limit", "single_buffer"))
def _adapter_call(x, gamma_arr, w1_bf, b1_f32, w2_bf, b2_f32, *,
                  tm, tn, vmem_limit, single_buffer):
    n, d = x.shape
    n_pad = _round_up(n, tm)
    x_p = jnp.pad(x, ((0, n_pad - n), (0, 0))) if n_pad != n else x
    grid = (n_pad // tm, d // tn)
    resident = tn == d

    def spec(shape, index_map, buffers=None):
        if buffers is not None and single_buffer:
            return pl.BlockSpec(shape, index_map,
                                pipeline_mode=pl.Buffered(buffers))
        return pl.BlockSpec(shape, index_map)

    w_buf = 1 if resident else None     # single-buffer only constant-index ops

    in_specs = [
        pl.BlockSpec(memory_space=pltpu.MemorySpace.SMEM),      # gamma (1, 1)
        pl.BlockSpec((tm, d), lambda i, j: (i, 0)),             # x tile
        spec((d, tn), lambda i, j: (0, j), w_buf),              # w1 block
        spec((1, tn), lambda i, j: (0, j), w_buf),              # b1 block
        spec((tn, d), lambda i, j: (j, 0), w_buf),              # w2 block
        spec((1, d), lambda i, j: (0, 0), 1),                   # b2 (resident)
    ]

    cost = pl.CostEstimate(
        flops=4 * n_pad * d * d,                    # two (n,d)x(d,d) matmuls
        transcendentals=n_pad * d,                  # one erf per hidden elem
        bytes_accessed=8 * n_pad * d + 4 * d * d + 8 * d,
    )

    out = pl.pallas_call(
        adapter_kernel,
        out_shape=jax.ShapeDtypeStruct((n_pad, d), jnp.float32),
        grid_spec=pltpu.PrefetchScalarGridSpec(
            num_scalar_prefetch=0,
            grid=grid,
            in_specs=in_specs,
            out_specs=pl.BlockSpec((tm, d), lambda i, j: (i, 0)),
            scratch_shapes=[pltpu.VMEM((tm, d), jnp.float32)],
        ),
        compiler_params=pltpu.CompilerParams(
            dimension_semantics=("parallel", "arbitrary"),
            vmem_limit_bytes=int(vmem_limit),
        ),
        cost_estimate=cost,
    )(gamma_arr, x_p, w1_bf, b1_f32, w2_bf, b2_f32)

    if n_pad != n:
        out = out[:n]
    # repeat(texts, 'n c -> n b c', b=1): metadata-only singleton-axis insert.
    return out.reshape(n, 1, d)


def embedding_adapter(x, gamma, w1_bf, b1_f32, w2_bf, b2_f32, *, force_tn=None):
    """x: (N, D) f32, gamma scalar, params from prepare_adapter_params().

    Returns (N, 1, D) f32 == x + gamma * fc(x), repeated 'n c -> n b c', b=1.
    """
    n, d = x.shape
    budget = _vmem_budget_bytes()
    tm, tn = _plan_tiles(n, d, budget)
    if force_tn is not None:
        tn = int(force_tn)
    assert d % tn == 0 and (tn == d or tn % 128 == 0)
    gamma_arr = jnp.asarray(gamma, jnp.float32).reshape(1, 1)
    return _adapter_call(x, gamma_arr, w1_bf, b1_f32, w2_bf, b2_f32,
                         tm=int(tm), tn=int(tn), vmem_limit=int(budget),
                         single_buffer=_single_buffer_supported())


# --------------------------------------------------------------------------- #
# Self-test
# --------------------------------------------------------------------------- #
if __name__ == "__main__":
    key = jax.random.PRNGKey(0)

    def run_case(n, emb_dim, force_tn=None):
        ks = jax.random.split(jax.random.fold_in(key, emb_dim), 5)
        x = jax.random.normal(ks[0], (n, emb_dim), dtype=jnp.float32)
        gamma = jnp.float32(0.5)

        bound = 1.0 / math.sqrt(emb_dim)
        w1 = jax.random.uniform(ks[1], (emb_dim, emb_dim), jnp.float32, -bound, bound)
        b1 = jax.random.uniform(ks[2], (emb_dim,), jnp.float32, -bound, bound)
        w2 = jax.random.uniform(ks[3], (emb_dim, emb_dim), jnp.float32, -bound, bound)
        b2 = jax.random.uniform(ks[4], (emb_dim,), jnp.float32, -bound, bound)

        params = prepare_adapter_params(w1, b1, w2, b2)   # one-time init cast
        out = embedding_adapter(x, gamma, *params, force_tn=force_tn)
        out = jax.block_until_ready(out)

        # Pure-f32 reference (exact GELU). Tolerance absorbs bf16 MXU inputs.
        h = x @ w1 + b1
        h = 0.5 * h * (1.0 + jax.lax.erf(h * jnp.float32(1.0 / math.sqrt(2.0))))
        y = h @ w2 + b2
        ref = (x + gamma * y).reshape(n, 1, emb_dim)

        assert out.shape == (n, 1, emb_dim)
        err = float(jnp.max(jnp.abs(out - ref)))
        assert jnp.allclose(out, ref, atol=3e-2, rtol=3e-2), err

    # Case 1: N not a multiple of 8 (row padding), resident weights, 2 row steps.
    run_case(12, 128)
    # Case 2: force a 2-step hidden-dim grid to exercise the streamed-weight
    # accumulation path used when bf16 weights would not fit VMEM.
    run_case(16, 256, force_tn=128)

    print("KERNEL_OK")
</pallas_src>

<mosaic_0001>
module attributes {stable_mosaic.version = 11 : i64} {
  func.func @_probe_kernel(%arg0: i32, %arg1: memref<8x128xf32, #tpu.memory_space<vmem>>, %arg2: memref<8x128xf32, #tpu.memory_space<vmem>>) attributes {dimension_semantics = [#tpu.dimension_semantics<arbitrary>], iteration_bounds = array<i64: 1>, scalar_prefetch = 0 : i64, scratch_operands = 0 : i64, tpu.core_type = #tpu.core_type<tc>, window_params = [{pipeline_mode = #tpu.pipeline_mode<synchronous>, transform_indices = @transform_0, window_bounds = array<i64: 8, 128>}, {pipeline_mode = #tpu.pipeline_mode<synchronous>, transform_indices = @transform_1, window_bounds = array<i64: 8, 128>}]} {
    %c0 = arith.constant 0 : index
    %c0_0 = arith.constant 0 : index
    %0 = vector.load %arg1[%c0, %c0_0] : memref<8x128xf32, #tpu.memory_space<vmem>>, vector<8x128xf32>
    %cst = arith.constant 1.000000e+00 : f32
    %1 = vector.broadcast %cst : f32 to vector<8x128xf32>
    %2 = arith.addf %0, %1 : vector<8x128xf32>
    %c0_1 = arith.constant 0 : index
    %c0_2 = arith.constant 0 : index
    %3 = vector.load %arg2[%c0_1, %c0_2] : memref<8x128xf32, #tpu.memory_space<vmem>>, vector<8x128xf32>
    tpu.vector_store %arg2[%c0_1, %c0_2], %2 {strides = array<i32>} : memref<8x128xf32, #tpu.memory_space<vmem>>, vector<8x128xf32>,
    return
  }
  func.func @transform_0(%arg0: i32) -> (i32, i32) {
    %c0_i32 = arith.constant 0 : i32
    %c0_i32_0 = arith.constant 0 : i32
    %c0_i32_1 = arith.constant 0 : i32
    return %c0_i32, %c0_i32_0 : i32, i32
  }
  func.func @transform_1(%arg0: i32) -> (i32, i32) {
    %c0_i32 = arith.constant 0 : i32
    %c0_i32_0 = arith.constant 0 : i32
    %c0_i32_1 = arith.constant 0 : i32
    return %c0_i32, %c0_i32_0 : i32, i32
  }
}

module attributes {stable_mosaic.version = 11 : i64} {
  func.func @adapter_kernel(%arg0: i32, %arg1: i32, %arg2: memref<1x1xf32, #tpu.memory_space<smem>>, %arg3: memref<8x128xf32, #tpu.memory_space<vmem>>, %arg4: memref<128x128xbf16, #tpu.memory_space<vmem>>, %arg5: memref<1x128xf32, #tpu.memory_space<vmem>>, %arg6: memref<128x128xbf16, #tpu.memory_space<vmem>>, %arg7: memref<1x128xf32, #tpu.memory_space<vmem>>, %arg8: memref<8x128xf32, #tpu.memory_space<vmem>>, %arg9: memref<8x128xf32, #tpu.memory_space<vmem>>) attributes {dimension_semantics = [#tpu.dimension_semantics<parallel>, #tpu.dimension_semantics<arbitrary>], iteration_bounds = array<i64: 2, 1>, scalar_prefetch = 0 : i64, scratch_operands = 1 : i64, tpu.core_type = #tpu.core_type<tc>, window_params = [{transform_indices = @transform_0, window_bounds = array<i64: 1, 1>}, {transform_indices = @transform_1, window_bounds = array<i64: 8, 128>}, {transform_indices = @transform_2, window_bounds = array<i64: 128, 128>}, {transform_indices = @transform_3, window_bounds = array<i64: 1, 128>}, {transform_indices = @transform_4, window_bounds = array<i64: 128, 128>}, {pipeline_mode = #tpu.pipeline_mode<synchronous>, transform_indices = @transform_5, window_bounds = array<i64: 1, 128>}, {transform_indices = @transform_6, window_bounds = array<i64: 8, 128>}]} {
    %c0_i32 = arith.constant 0 : i32
    %0 = arith.cmpi eq, %arg1, %c0_i32 : i32
    %1 = arith.extui %0 : i1 to i32
    %c0_i32_0 = arith.constant 0 : i32
    %2 = arith.cmpi ne, %1, %c0_i32_0 : i32
    scf.if %2 {
      %cst_18 = arith.constant 0.000000e+00 : f32
      %27 = vector.broadcast %cst_18 : f32 to vector<8x128xf32>
      %c0_19 = arith.constant 0 : index
      %c0_20 = arith.constant 0 : index
      %28 = vector.load %arg9[%c0_19, %c0_20] : memref<8x128xf32, #tpu.memory_space<vmem>>, vector<8x128xf32>
      tpu.vector_store %arg9[%c0_19, %c0_20], %27 {strides = array<i32>} : memref<8x128xf32, #tpu.memory_space<vmem>>, vector<8x128xf32>,
    } else {
    }
    %c0 = arith.constant 0 : index
    %c0_1 = arith.constant 0 : index
    %3 = vector.load %arg3[%c0, %c0_1] : memref<8x128xf32, #tpu.memory_space<vmem>>, vector<8x128xf32>
    %4 = arith.truncf %3 : vector<8x128xf32> to vector<8x128xbf16>
    %c0_2 = arith.constant 0 : index
    %c0_3 = arith.constant 0 : index
    %5 = vector.load %arg4[%c0_2, %c0_3] : memref<128x128xbf16, #tpu.memory_space<vmem>>, vector<128x128xbf16>
    %cst = arith.constant dense<0.000000e+00> : vector<8x128xf32>
    %6 = tpu.matmul %4, %5, %cst {dimension_numbers = #tpu.dot_dimension_numbers<[1], [0], [0], [1], [0, 0, 1, 1], [], []>} : vector<8x128xbf16>, vector<128x128xbf16>, vector<8x128xf32> -> vector<8x128xf32>
    %c0_4 = arith.constant 0 : index
    %c0_5 = arith.constant 0 : index
    %7 = vector.load %arg5[%c0_4, %c0_5] : memref<1x128xf32, #tpu.memory_space<vmem>>, vector<1x128xf32>
    %8 = vector.broadcast %7 : vector<1x128xf32> to vector<8x128xf32>
    %9 = arith.addf %6, %8 : vector<8x128xf32>
    %cst_6 = arith.constant 5.000000e-01 : f32
    %10 = vector.broadcast %cst_6 : f32 to vector<8x128xf32>
    %11 = arith.mulf %10, %9 : vector<8x128xf32>
    %cst_7 = arith.constant 0.707106769 : f32
    %12 = vector.broadcast %cst_7 : f32 to vector<8x128xf32>
    %13 = arith.mulf %9, %12 : vector<8x128xf32>
    %14 = math.erf %13 : vector<8x128xf32>
    %cst_8 = arith.constant 1.000000e+00 : f32
    %15 = vector.broadcast %cst_8 : f32 to vector<8x128xf32>
    %16 = arith.addf %15, %14 : vector<8x128xf32>
    %17 = arith.mulf %11, %16 : vector<8x128xf32>
    %c0_9 = arith.constant 0 : index
    %c0_10 = arith.constant 0 : index
    %18 = vector.load %arg9[%c0_9, %c0_10] : memref<8x128xf32, #tpu.memory_space<vmem>>, vector<8x128xf32>
    %19 = arith.truncf %17 : vector<8x128xf32> to vector<8x128xbf16>
    %c0_11 = arith.constant 0 : index
    %c0_12 = arith.constant 0 : index
    %20 = vector.load %arg6[%c0_11, %c0_12] : memref<128x128xbf16, #tpu.memory_space<vmem>>, vector<128x128xbf16>
    %cst_13 = arith.constant dense<0.000000e+00> : vector<8x128xf32>
    %21 = tpu.matmul %19, %20, %cst_13 {dimension_numbers = #tpu.dot_dimension_numbers<[1], [0], [0], [1], [0, 0, 1, 1], [], []>} : vector<8x128xbf16>, vector<128x128xbf16>, vector<8x128xf32> -> vector<8x128xf32>
    %22 = arith.addf %18, %21 : vector<8x128xf32>
    %c0_14 = arith.constant 0 : index
    %c0_15 = arith.constant 0 : index
    %23 = vector.load %arg9[%c0_14, %c0_15] : memref<8x128xf32, #tpu.memory_space<vmem>>, vector<8x128xf32>
    tpu.vector_store %arg9[%c0_14, %c0_15], %22 {strides = array<i32>} : memref<8x128xf32, #tpu.memory_space<vmem>>, vector<8x128xf32>,
    %c0_i32_16 = arith.constant 0 : i32
    %24 = arith.cmpi eq, %arg1, %c0_i32_16 : i32
    %25 = arith.extui %24 : i1 to i32
    %c0_i32_17 = arith.constant 0 : i32
    %26 = arith.cmpi ne, %25, %c0_i32_17 : i32
    scf.if %26 {
      %c0_18 = arith.constant 0 : index
      %c0_19 = arith.constant 0 : index
      %27 = memref.load %arg2[%c0_18, %c0_19] : memref<1x1xf32, #tpu.memory_space<smem>>
      %c0_20 = arith.constant 0 : index
      %c0_21 = arith.constant 0 : index
      %28 = vector.load %arg9[%c0_20, %c0_21] : memref<8x128xf32, #tpu.memory_space<vmem>>, vector<8x128xf32>
      %c0_22 = arith.constant 0 : index
      %c0_23 = arith.constant 0 : index
      %29 = vector.load %arg7[%c0_22, %c0_23] : memref<1x128xf32, #tpu.memory_space<vmem>>, vector<1x128xf32>
      %30 = vector.broadcast %29 : vector<1x128xf32> to vector<8x128xf32>
      %31 = arith.addf %28, %30 : vector<8x128xf32>
      %c0_24 = arith.constant 0 : index
      %c0_25 = arith.constant 0 : index
      %32 = vector.load %arg3[%c0_24, %c0_25] : memref<8x128xf32, #tpu.memory_space<vmem>>, vector<8x128xf32>
      %33 = vector.broadcast %27 : f32 to vector<8x128xf32>
      %34 = arith.mulf %33, %31 : vector<8x128xf32>
      %35 = arith.addf %32, %34 : vector<8x128xf32>
      %c0_26 = arith.constant 0 : index
      %c0_27 = arith.constant 0 : index
      %36 = vector.load %arg8[%c0_26, %c0_27] : memref<8x128xf32, #tpu.memory_space<vmem>>, vector<8x128xf32>
      tpu.vector_store %arg8[%c0_26, %c0_27], %35 {strides = array<i32>} : memref<8x128xf32, #tpu.memory_space<vmem>>, vector<8x128xf32>,
    } else {
    }
    return
  }
  func.func @transform_0(%arg0: i32, %arg1: i32) -> (i32, i32) {
    %c0_i32 = arith.constant 0 : i32
    %c0_i32_0 = arith.constant 0 : i32
    %c0_i32_1 = arith.constant 0 : i32
    return %c0_i32, %c0_i32_0 : i32, i32
  }
  func.func @transform_1(%arg0: i32, %arg1: i32) -> (i32, i32) {
    %c0_i32 = arith.constant 0 : i32
    %c0_i32_0 = arith.constant 0 : i32
    return %arg0, %c0_i32 : i32, i32
  }
  func.func @transform_2(%arg0: i32, %arg1: i32) -> (i32, i32) {
    %c0_i32 = arith.constant 0 : i32
    %c0_i32_0 = arith.constant 0 : i32
    return %c0_i32, %arg1 : i32, i32
  }
  func.func @transform_3(%arg0: i32, %arg1: i32) -> (i32, i32) {
    %c0_i32 = arith.constant 0 : i32
    %c0_i32_0 = arith.constant 0 : i32
    return %c0_i32, %arg1 : i32, i32
  }
  func.func @transform_4(%arg0: i32, %arg1: i32) -> (i32, i32) {
    %c0_i32 = arith.constant 0 : i32
    %c0_i32_0 = arith.constant 0 : i32
    return %arg1, %c0_i32 : i32, i32
  }
  func.func @transform_5(%arg0: i32, %arg1: i32) -> (i32, i32) {
    %c0_i32 = arith.constant 0 : i32
    %c0_i32_0 = arith.constant 0 : i32
    %c0_i32_1 = arith.constant 0 : i32
    return %c0_i32, %c0_i32_0 : i32, i32
  }
  func.func @transform_6(%arg0: i32, %arg1: i32) -> (i32, i32) {
    %c0_i32 = arith.constant 0 : i32
    %c0_i32_0 = arith.constant 0 : i32
    return %arg0, %c0_i32 : i32, i32
  }
}

</mosaic_0001>

<bundles_post_ra>
// kernel: tpu_custom_call.1
= control target key start
LH: loop header
LB: loop body
LE: loop exit
PB: predicated region body
PF: predicated region fallthrough
CT: control target
= control target key end

     0   :  { %6 = vsyncpa [#allocation3], 0  ;;  %s103_s0 = inlined_call_operand.hbm [shape: f32[8,128], index: 0, kind: input, shape index: {}]   ;;  %s104_s1 = inlined_call_operand.hbm [shape: f32[8,128], index: 1, kind: output, shape index: {}]  }
   0x1   :  { %7 = vsyncpa [#allocation4], 0  ;;  %s85_s6 = smov [#allocation2]  }
   0x2   :  { %s14_s7 = sshll.u32 %s85_s6, 4  ;;  %s15_s7 = int_to_ptr.vmem [resolvable:$true] %s14_s7 }
   0x3   :  { %s49_s8 = scalar_lea.vmem %s15_s7, 128  ;;  %p54_p1 = scmp.lt.s32.totalorder %s15_s7, %s15_s7 }
   0x4   :  { %p50_p0 = scmp.ne.s32.totalorder %s15_s7, %s49_s8  ;;  %p55_p2 = scmp.lt.s32.totalorder %s49_s8, %s49_s8 }
   0x6   :  { %p56_p3 = por %p55_p2, %p54_p1 }
   0x8   :  { %p57_p4 = pnand %p56_p3, %p50_p0 }
   0xa   :  { %60 = shalt.err (!%p57_p4)
}
   0xb   :  { %17 = dma.hbm_to_vmem [thread:$0]  %s103_s0, 128, %s15_s7, [#allocation3]  }
   0xc   :  { %81 = dma.done.wait [#allocation3], 128  }
   0xd   :  { %82 = vsyncadd [#allocation3], 4294967168  ;;  %s86_s11 = smov [#allocation5]   ;;  %v21_v0 = vld [vmem:[#allocation2] sm:$0xff] }
   0xe   :  { %s30_s12 = sshll.u32 %s86_s11, 4  ;;  %v22_v1 = vadd.f32 1.0, %v21_v0  ;;  %s31_s12 = int_to_ptr.vmem [resolvable:$true] %s30_s12 }
   0xf   :  { %s61_s13 = scalar_lea.vmem %s31_s12, 128  ;;  %p66_p6 = scmp.lt.s32.totalorder %s31_s12, %s31_s12 }
  0x10   :  { %23 = vst [vmem:[#allocation5] sm:$0xff] %v22_v1  ;;  %p62_p5 = scmp.ne.s32.totalorder %s31_s12, %s61_s13  ;;  %p67_p7 = scmp.lt.s32.totalorder %s61_s13, %s61_s13 }
  0x12   :  { %p68_p8 = por %p67_p7, %p66_p6 }
  0x14   :  { %p69_p9 = pnand %p68_p8, %p62_p5 }
  0x16   :  { %72 = shalt.err (!%p69_p9)
}
  0x17   :  { %33 = dma.vmem_to_hbm [thread:$0]  %s31_s12, 128, %s104_s1, [#allocation4]  }
  0x18   :  { %83 = dma.done.wait [#allocation4], 128  }
  0x19   :  { %84 = vsyncadd [#allocation4], 4294967168 }
  0x1a   :  { %37 = vsyncpa [#allocation3], 1 }
  0x1b   :  { %38 = vsyncpa [#allocation4], 1 }

// kernel: _adapter_call.1
= control target key start
LH: loop header
LB: loop body
LE: loop exit
PB: predicated region body
PF: predicated region fallthrough
CT: control target
= control target key end

     0   :  { %s1050_s0 = inlined_call_operand.<no memory space> [shape: f32[1,1], index: 0, kind: input, shape index: {}]   ;;  %s1051_s1 = inlined_call_operand.vmem [shape: f32[16,128], index: 1, kind: input, shape index: {}]   ;;  %s1052_s2 = inlined_call_operand.hbm [shape: bf16[128,128], index: 2, kind: input, shape index: {}]   ;;  %s1053_s3 = inlined_call_operand.vmem [shape: f32[1,128], index: 3, kind: input, shape index: {}]   ;;  %s1054_s4 = inlined_call_operand.hbm [shape: bf16[128,128], index: 4, kind: input, shape index: {}]   ;;  %s1055_s5 = inlined_call_operand.vmem [shape: f32[1,128], index: 5, kind: input, shape index: {}]   ;;  %s1056_s6 = inlined_call_operand.vmem [shape: f32[16,128], index: 6, kind: output, shape index: {}]  }
   0x1   :  { %11 = sst [smem:[#allocation3]] %s1050_s0 }
   0x2   :  { %12 = vsyncpa [#allocation5], 0 }
   0x3   :  { %13 = vsyncpa [#allocation7], 0  ;;  %s955_s23 = smov 0   ;;  %s957_s24 = smov 0  }
   0x4   :  { %s959_s25 = smov 0  }
   0x5 LB: > { %s670_s0 = sadd.s32 4294967295, %s909_s25   ;;  %s31_s26 = sadd.s32 1, %s905_s24  ;;  %s909_s25 = sphi %s959_s25, %s19_s25   ;;  %s905_s24 = sphi %s957_s24, %s1061_s24   ;;  %s901_s23 = sphi %s955_s23, %s1060_s23  }
   0x6   : > { %p33_p0 = scmp.ge.s32.totalorder %s31_s26, 2  ;;  %p672_p1 = scmp.ge.s32.totalorder %s909_s25, 1 }
   0x7   : > { %p208_p2 = scmp.lt.s32.totalorder %s909_s25, 3  ;;  %p980_p4 = scmp.eq.s32.totalorder %s670_s0, 0 }
   0x8   : > { %s1063_s26 = smov (%p33_p0, %s31_s26), 0  ;;  %s911_s29 = smov [#allocation4]  }
   0x9   : > { %p976_p3 = pnand %p672_p1, %p208_p2  ;;  %s225_s30 = sshll.u32 %s911_s29, 4  ;;  %s226_s30 = int_to_ptr.vmem [resolvable:$true] %s225_s30 }
   0xa   : > { %s912_s8 = smov [#allocation6]   ;;  %s838_s10 = scalar_lea.vmem %s226_s30, 1024 }
   0xb   : > { %p768_p5 = pneg %p976_p3  ;;  %s247_s9 = sshll.u32 %s912_s8, 4  ;;  %s248_s9 = int_to_ptr.vmem [resolvable:$true] %s247_s9 }
   0xc   : > { %p839_p8 = scmp.ne.s32.totalorder %s226_s30, %s838_s10  ;;  %p846_p11 = scmp.lt.s32.totalorder %s226_s30, %s226_s30 }
   0xd   : > { %p988_p6 = pnand %p980_p4, %p768_p5  ;;  %p847_p12 = scmp.lt.s32.totalorder %s838_s10, %s838_s10 }
   0xf   : > { %p829_p7 = pneg %p988_p6  ;;  %p848_p13 = por %p847_p12, %p846_p11 }
  0x11   : > { %p841_p9 = pnand %p839_p8, %p829_p7 }
  0x13   : > { %p842_p10 = pneg %p841_p9 }
  0x15   : > { %p849_p0 = pnand %p848_p13, %p842_p10 }
  0x17   : > { %852 = shalt.err (!%p849_p0)
}
  0x18   : > { %s913_s11 = smov 64   ;;  %s914_s12 = smov 4  }
  0x19   : > { %771 = dma.hbm_to_vmem [thread:$0]  (!%p988_p6), %s1052_s2, 1024, %s226_s30, [#allocation5], %s913_s11, %s913_s11, %s914_s12  }
  0x1a   : > { %s864_s15 = scalar_lea.vmem %s248_s9, 1024  ;;  %p872_p8 = scmp.lt.s32.totalorder %s248_s9, %s248_s9 }
  0x1b   : > { %p865_p1 = scmp.ne.s32.totalorder %s248_s9, %s864_s15  ;;  %p873_p9 = scmp.lt.s32.totalorder %s864_s15, %s864_s15 }
  0x1d   : > { %p867_p2 = pnand %p865_p1, %p829_p7  ;;  %p874_p11 = por %p873_p9, %p872_p8 }
  0x1f   : > { %p868_p5 = pneg %p867_p2 }
  0x21   : > { %p875_p10 = pnand %p874_p11, %p868_p5 }
  0x23   : > { %878 = shalt.err (!%p875_p10)
}
  0x24   : > { %774 = dma.hbm_to_vmem [thread:$0]  (!%p988_p6), %s1054_s4, 1024, %s248_s9, [#allocation7], %s913_s11, %s913_s11, %s914_s12  }
  0x25   : > { %273 = sbr.rel (%p976_p3) target bundleno = 496 (0x1f0), region = 44 }
  0x2a   : > { %892 = dma.done.wait (%p980_p4), [#allocation5], 1024  }
  0x2b   : > { %894 = vsyncadd (%p980_p4), [#allocation5], 4294966272 }
  0x2c   : > { %896 = dma.done.wait (%p980_p4), [#allocation7], 1024  }
  0x2d   : > { %898 = vsyncadd (%p980_p4), [#allocation7], 4294966272  ;;  %v915_v0 = vmov 0.0   ;;  %vm916_vm0 = vmmov 0   ;;  %v809_v1 = vld [vmem:[#allocation4 + $0x38] sm:$0xff]   ;;  %v810_v2 = vld [vmem:[#allocation4 + $0x30] sm:$0xff]  }
  0x2e   : > { %720 = vmatprep.subr.bf16.mxu0 %v915_v0  ;;  %736 = vmatprep.mubr.msk.bf16.mxu0 %vm916_vm0, %v915_v0  ;;  %v811_v3 = vld [vmem:[#allocation4 + $0x28] sm:$0xff]   ;;  %v817_v4 = vld [vmem:[#allocation6 + $0x38] sm:$0xff]   ;;  %v812_v5 = vld [vmem:[#allocation4 + $0x20] sm:$0xff]   ;;  %p308_p3 = scmp.lt.s32.totalorder %s901_s23, 1  ;;  %s555_s27 = sld [smem:[#allocation3]] }
  0x2f   : > { %740 = vmatprep.subr.bf16.mxu1 %v915_v0  ;;  %756 = vmatprep.mubr.msk.bf16.mxu1 %vm916_vm0, %v915_v0  ;;  %v818_v6 = vld [vmem:[#allocation6 + $0x30] sm:$0xff]   ;;  %v813_v7 = vld [vmem:[#allocation4 + $0x18] sm:$0xff]   ;;  %v815_v9 = vld [vmem:[#allocation4 + $0x8] sm:$0xff]  }
  0x30   : > { %721 = vmatpush3.bf16.msra.mxu0 %v809_v1  ;;  %741 = vmatpush3.bf16.msra.mxu1 %v817_v4  ;;  %s1065_s23 = smov (!%p308_p3, %s901_s23), 1  ;;  %v814_v8 = vld [vmem:[#allocation4 + $0x10] sm:$0xff]   ;;  %v816_v10 = vld [vmem:[#allocation4] sm:$0xff]   ;;  %v819_v13 = vld [vmem:[#allocation6 + $0x28] sm:$0xff]  }
  0x31   : > { %722 = vmatprep.subr.bf16.mxu0 %v915_v0  ;;  %742 = vmatprep.subr.bf16.mxu1 %v915_v0  ;;  %s680_s18 = sshll.u32 %s1065_s23, 3  ;;  %v820_v14 = vld [vmem:[#allocation6 + $0x20] sm:$0xff]   ;;  %v821_v15 = vld [vmem:[#allocation6 + $0x18] sm:$0xff]   ;;  %v822_v16 = vld [vmem:[#allocation6 + $0x10] sm:$0xff]  }
  0x32   : > { %s311_s21 = scalar_lea.vmem %s1051_s1, %s680_s18  ;;  %v823_v17 = vld [vmem:[#allocation6 + $0x8] sm:$0xff]   ;;  %v824_v18 = vld [vmem:[#allocation6] sm:$0xff]   ;;  %s319_s8 = scalar_lea.vmem %s1056_s6, %s680_s18 }
  0x33   : > { %v326_v11 = vld [vmem:[%s311_s21] sm:$0xff] }
  0x34   : > { %723 = vmatpush3.bf16.msra.mxu0 %v810_v2  ;;  %743 = vmatpush3.bf16.msra.mxu1 %v818_v6  ;;  %v327_v12 = vpack.c.bf16 %v326_v11, %v326_v11  ;;  %v682_v19 = vld [vmem:[%s1053_s3] ss:$0 sm:$0xff]  ;;  %v566_v33 = vstv %s555_s27 }
  0x35   : > { %724 = vmatprep.subr.bf16.mxu0 %v915_v0  ;;  %744 = vmatprep.subr.bf16.mxu1 %v915_v0  ;;  %v699_v31 = vld [vmem:[%s1055_s5] ss:$0 sm:$0xff] }
  0x38   : > { %725 = vmatpush3.bf16.msra.mxu0 %v811_v3  ;;  %745 = vmatpush3.bf16.msra.mxu1 %v819_v13 }
  0x39   : > { %726 = vmatprep.subr.bf16.mxu0 %v915_v0  ;;  %746 = vmatprep.subr.bf16.mxu1 %v915_v0 }
  0x3c   : > { %727 = vmatpush3.bf16.msra.mxu0 %v812_v5  ;;  %747 = vmatpush3.bf16.msra.mxu1 %v820_v14 }
  0x3d   : > { %728 = vmatprep.subr.bf16.mxu0 %v915_v0  ;;  %748 = vmatprep.subr.bf16.mxu1 %v915_v0 }
  0x40   : > { %729 = vmatpush3.bf16.msra.mxu0 %v813_v7  ;;  %749 = vmatpush3.bf16.msra.mxu1 %v821_v15 }
  0x41   : > { %730 = vmatprep.subr.bf16.mxu0 %v915_v0  ;;  %750 = vmatprep.subr.bf16.mxu1 %v915_v0 }
  0x44   : > { %731 = vmatpush3.bf16.msra.mxu0 %v814_v8  ;;  %751 = vmatpush3.bf16.msra.mxu1 %v822_v16 }
  0x45   : > { %732 = vmatprep.subr.bf16.mxu0 %v915_v0  ;;  %752 = vmatprep.subr.bf16.mxu1 %v915_v0 }
  0x48   : > { %733 = vmatpush3.bf16.msra.mxu0 %v815_v9  ;;  %753 = vmatpush3.bf16.msra.mxu1 %v823_v17 }
  0x49   : > { %734 = vmatprep.subr.bf16.mxu0 %v915_v0  ;;  %754 = vmatprep.subr.bf16.mxu1 %v915_v0 }
  0x4c   : > { %735 = vmatpush3.bf16.msra.mxu0 %v816_v10  ;;  %755 = vmatpush3.bf16.msra.mxu1 %v824_v18 }
  0x4f   : > { %737 = vmatmul.mubr.bf16.vlgmr.msra.gmra.mxu0 %v327_v12 }
 0x10f   : > { %v433_v20 = vpop.f32.mrf.mxu0 }
 0x110   : > { %v434_v21 = vadd.f32 %v682_v19, %v433_v20 }
 0x111   : > { %v738_v22 = vpop.f32.mrf.mxu0 }
 0x112   : > { %v440_v23 = vmul.f32 0.70710677, %v434_v21  ;;  %v439_v27 = vmul.f32 0.5, %v434_v21 }
 0x113   : > { %v436_v24 = vpop.f32.mrf.mxu0 }
 0x114   : > { %825 = verf.f32 %v440_v23 }
 0x115   : > { %v739_v25 = vpop.f32.mrf.mxu0 }
 0x121   : > { %v826_v26 = vpop.eup %825 }
 0x122   : > { %v442_v28 = vadd.f32 1.0, %v826_v26 }
 0x124   : > { %v443_v29 = vmul.f32 %v442_v28, %v439_v27 }
 0x126   : > { %v445_v30 = vpack.c.bf16 %v443_v29, %v443_v29 }
 0x128   : > { %757 = vmatmul.mubr.bf16.vlgmr.msra.gmra.mxu1 %v445_v30 }
 0x1e8   : > { %v544_v32 = vpop.f32.mrf.mxu1 }
 0x1e9   : > { %v564_v34 = vadd.f32 %v699_v31, %v544_v32 }
 0x1ea   : > { %v758_v35 = vpop.f32.mrf.mxu1 }
 0x1eb   : > { %v567_v36 = vmul.f32 %v566_v33, %v564_v34 }
 0x1ec   : > { %v547_v37 = vpop.f32.mrf.mxu1 }
 0x1ed   : > { %v568_v38 = vadd.f32 %v567_v36, %v326_v11 }
 0x1ee   : > { %v759_v39 = vpop.f32.mrf.mxu1 }
 0x1ef   : > { %569 = vst [vmem:[%s319_s8] sm:$0xff] %v568_v38 }
 0x1f0 PF: > { %s19_s25 = sadd.s32 1, %s909_s25   ;;  %s1060_s23 = smov %s905_s24 }
 0x1f1   : > { %p16_p4 = scmp.ge.s32.totalorder %s19_s25, 4   ;;  %s1061_s24 = smov %s1063_s26 }
 0x1f3   :  { %18 = sbr.rel (!%p16_p4) target bundleno = 5 (0x5), region = 96 }
 0x1f8   :  { %589 = vsyncpa [#allocation5], 1 }
 0x1f9   :  { %591 = vsyncpa [#allocation5 + $0x1], 1 }
 0x1fa   :  { %592 = vsyncpa [#allocation7], 1 }

</bundles_post_ra>
